<compile_context>
chip_gen: v7x
topology: tpu7x:2x2x1
jax: 0.10.0
libtpu: 0.0.40
codegen_flags: <defaults>
</compile_context>

<pallas_src>
import jax
import jax.numpy as jnp
from jax.experimental import pallas as pl
from jax.experimental.pallas import tpu as pltpu

_LANES = 128  # lane width (last dim)


def _tile_config():
    """Pick (block_rows, vmem_limit_bytes, dimension_semantics) per TPU gen."""
    try:
        kind = jax.devices()[0].device_kind.lower()
    except Exception:
        kind = ""
    if "v7" in kind:
        # 4 MiB per operand block, ~24 MiB double-buffered; split across 2 TCs.
        return 8192, 32 * 1024 * 1024, (pltpu.CORE_PARALLEL,)
    if "v6" in kind:
        return 8192, 32 * 1024 * 1024, ("parallel",)
    # v5e and anything unknown: stay within the 16 MiB default scoped VMEM.
    return 4096, None, ("parallel",)


_TILE_CONFIG = _tile_config()


def _ema_blend_kernel(mu_ref, x_ref, last_ref, out_ref):
    mu = mu_ref[0]                                   # f32 scalar from SMEM
    x = x_ref[...].astype(jnp.float32)
    last = last_ref[...].astype(jnp.float32)
    out_ref[...] = (mu * x + (1.0 - mu) * last).astype(out_ref.dtype)


@jax.jit
def _ema_blend(x, last_average, mu):
    orig_shape = x.shape
    out_dtype = jnp.promote_types(x.dtype, last_average.dtype)

    xf = jnp.ravel(x)
    lf = jnp.ravel(last_average)                     # keep native dtype
    n = xf.shape[0]

    rows = pl.cdiv(n, _LANES)
    padded = (rows * _LANES) != n
    if padded:                                       # rare for NN tensors
        pad = rows * _LANES - n
        xf = jnp.pad(xf, (0, pad))
        lf = jnp.pad(lf, (0, pad))
    x2 = xf.reshape(rows, _LANES)
    l2 = lf.reshape(rows, _LANES)

    block_rows, vmem_limit, dim_sem = _TILE_CONFIG
    if rows <= block_rows:
        block_rows = rows                            # single full-array block
    grid = (pl.cdiv(rows, block_rows),)              # ragged last block is masked

    mu_arr = jnp.asarray(mu, dtype=jnp.float32).reshape(1)

    cp_kwargs = dict(dimension_semantics=dim_sem)
    if vmem_limit is not None:
        cp_kwargs["vmem_limit_bytes"] = vmem_limit

    out2 = pl.pallas_call(
        _ema_blend_kernel,
        out_shape=jax.ShapeDtypeStruct((rows, _LANES), out_dtype),
        grid=grid,
        in_specs=[
            pl.BlockSpec(memory_space=pltpu.MemorySpace.SMEM),      # mu
            pl.BlockSpec((block_rows, _LANES), lambda i: (i, 0)),   # x tile
            pl.BlockSpec((block_rows, _LANES), lambda i: (i, 0)),   # last tile
        ],
        out_specs=pl.BlockSpec((block_rows, _LANES), lambda i: (i, 0)),
        compiler_params=pltpu.CompilerParams(**cp_kwargs),
    )(mu_arr, x2, l2)

    if padded:
        return out2.reshape(-1)[:n].reshape(orig_shape)
    return out2.reshape(orig_shape)


class EMA:
    """Mirrors the PyTorch EMA module (stateful first-call flag in Python)."""

    def __init__(self, mu):
        self.mu = float(mu)
        self.flag_first_time_passed = False

    def forward(self, x, last_average):
        if not self.flag_first_time_passed:
            # First call: new_average = x. No kernel, no read of last_average.
            self.flag_first_time_passed = True
            return jnp.asarray(x)
        return _ema_blend(x, last_average, self.mu)

    __call__ = forward


if __name__ == "__main__":
    key = jax.random.PRNGKey(0)
    k1, k2 = jax.random.split(key)
    x = jax.random.normal(k1, (2, 4, 16, 16), dtype=jnp.float32)
    last = jax.random.normal(k2, (2, 4, 16, 16), dtype=jnp.float32)

    mu = 0.9
    ema = EMA(mu)

    out1 = jax.block_until_ready(ema(x, last))   # first call  -> x
    out2 = jax.block_until_ready(ema(x, last))   # second call -> mu*x + (1-mu)*last

    ref1 = x
    ref2 = mu * x + (1.0 - mu) * last

    assert out1.shape == x.shape and out1.dtype == x.dtype
    assert out2.shape == x.shape and out2.dtype == x.dtype
    assert jnp.allclose(out1, ref1, atol=1e-6, rtol=1e-6)
    assert jnp.allclose(out2, ref2, atol=1e-5, rtol=1e-5)

    # Exercise the ragged (non-128-multiple) + mixed-dtype path too.
    k3, k4 = jax.random.split(k2)
    xb = jax.random.normal(k3, (3, 5, 7), dtype=jnp.bfloat16)
    lb = jax.random.normal(k4, (3, 5, 7), dtype=jnp.float32)
    ema2 = EMA(0.75)
    _ = ema2(xb, lb)                              # first call -> xb
    outb = jax.block_until_ready(ema2(xb, lb))
    refb = 0.75 * xb.astype(jnp.float32) + 0.25 * lb
    assert outb.shape == xb.shape and outb.dtype == jnp.float32
    assert jnp.allclose(outb, refb, atol=1e-2, rtol=1e-2)

    print("KERNEL_OK")
</pallas_src>

<mosaic_0001>
module attributes {stable_mosaic.version = 11 : i64} {
  func.func @_ema_blend_kernel(%arg0: i32, %arg1: memref<1xf32, #tpu.memory_space<smem>>, %arg2: memref<16x128xf32, #tpu.memory_space<vmem>>, %arg3: memref<16x128xf32, #tpu.memory_space<vmem>>, %arg4: memref<16x128xf32, #tpu.memory_space<vmem>>) attributes {dimension_semantics = [#tpu.dimension_semantics<parallel>], iteration_bounds = array<i64: 1>, scalar_prefetch = 0 : i64, scratch_operands = 0 : i64, tpu.core_type = #tpu.core_type<tc>, window_params = [{transform_indices = @transform_0, window_bounds = array<i64: 1>}, {transform_indices = @transform_1, window_bounds = array<i64: 16, 128>}, {transform_indices = @transform_2, window_bounds = array<i64: 16, 128>}, {transform_indices = @transform_3, window_bounds = array<i64: 16, 128>}]} {
    %c0 = arith.constant 0 : index
    %0 = memref.load %arg1[%c0] : memref<1xf32, #tpu.memory_space<smem>>
    %c0_0 = arith.constant 0 : index
    %c0_1 = arith.constant 0 : index
    %1 = vector.load %arg2[%c0_0, %c0_1] : memref<16x128xf32, #tpu.memory_space<vmem>>, vector<16x128xf32>
    %c0_2 = arith.constant 0 : index
    %c0_3 = arith.constant 0 : index
    %2 = vector.load %arg3[%c0_2, %c0_3] : memref<16x128xf32, #tpu.memory_space<vmem>>, vector<16x128xf32>
    %3 = vector.broadcast %0 : f32 to vector<16x128xf32>
    %4 = arith.mulf %3, %1 : vector<16x128xf32>
    %cst = arith.constant 1.000000e+00 : f32
    %5 = arith.subf %cst, %0 : f32
    %6 = vector.broadcast %5 : f32 to vector<16x128xf32>
    %7 = arith.mulf %6, %2 : vector<16x128xf32>
    %8 = arith.addf %4, %7 : vector<16x128xf32>
    %c0_4 = arith.constant 0 : index
    %c0_5 = arith.constant 0 : index
    %9 = vector.load %arg4[%c0_4, %c0_5] : memref<16x128xf32, #tpu.memory_space<vmem>>, vector<16x128xf32>
    tpu.vector_store %arg4[%c0_4, %c0_5], %8 {strides = array<i32>} : memref<16x128xf32, #tpu.memory_space<vmem>>, vector<16x128xf32>,
    return
  }
  func.func @transform_0(%arg0: i32) -> i32 {
    %c0_i32 = arith.constant 0 : i32
    %c0_i32_0 = arith.constant 0 : i32
    return %c0_i32 : i32
  }
  func.func @transform_1(%arg0: i32) -> (i32, i32) {
    %c0_i32 = arith.constant 0 : i32
    %c0_i32_0 = arith.constant 0 : i32
    return %arg0, %c0_i32 : i32, i32
  }
  func.func @transform_2(%arg0: i32) -> (i32, i32) {
    %c0_i32 = arith.constant 0 : i32
    %c0_i32_0 = arith.constant 0 : i32
    return %arg0, %c0_i32 : i32, i32
  }
  func.func @transform_3(%arg0: i32) -> (i32, i32) {
    %c0_i32 = arith.constant 0 : i32
    %c0_i32_0 = arith.constant 0 : i32
    return %arg0, %c0_i32 : i32, i32
  }
}

</mosaic_0001>

<bundles_post_ra>
// kernel: _ema_blend.1
= control target key start
LH: loop header
LB: loop body
LE: loop exit
PB: predicated region body
PF: predicated region fallthrough
CT: control target
= control target key end

     0   :  { %s79_s0 = inlined_call_operand.<no memory space> [shape: f32[1], index: 0, kind: input, shape index: {}]   ;;  %s80_s1 = inlined_call_operand.vmem [shape: f32[16,128], index: 1, kind: input, shape index: {}]   ;;  %s81_s2 = inlined_call_operand.vmem [shape: f32[16,128], index: 2, kind: input, shape index: {}]   ;;  %s82_s3 = inlined_call_operand.vmem [shape: f32[16,128], index: 3, kind: output, shape index: {}]  }
   0x1   :  { %v16_v0 = vld [vmem:[%s80_s1] sm:$0xff]  ;;  %v20_v2 = vstv %s79_s0  ;;  %s23_s20 = ssub.f32 1.0, %s79_s0  ;;  %v17_v3 = vld [vmem:[%s80_s1 + $0x8] sm:$0xff] }
   0x2   :  { %v18_v1 = vld [vmem:[%s81_s2] sm:$0xff]  ;;  %v21_v4 = vmul.f32 %v20_v2, %v16_v0  ;;  %v19_v5 = vld [vmem:[%s81_s2 + $0x8] sm:$0xff]  ;;  %v22_v6 = vmul.f32 %v20_v2, %v17_v3 }
   0x3   :  { %v24_v7 = vstv %s23_s20 }
   0x4   :  { %v25_v8 = vmul.f32 %v24_v7, %v18_v1  ;;  %v26_v9 = vmul.f32 %v24_v7, %v19_v5 }
   0x6   :  { %v27_v10 = vadd.f32 %v25_v8, %v21_v4  ;;  %v28_v11 = vadd.f32 %v26_v9, %v22_v6 }
   0x8   :  { %29 = vst [vmem:[%s82_s3] sm:$0xff] %v27_v10  ;;  %30 = vst [vmem:[%s82_s3 + $0x8] sm:$0xff] %v28_v11 }

</bundles_post_ra>
